<compile_context>
chip_gen: v6e
topology: v6e:2x2x1
jax: 0.10.0
libtpu: 0.0.40
codegen_flags: <defaults>
</compile_context>

<pallas_src>
import functools
import numpy as np
import jax
import jax.numpy as jnp
from jax import lax
from jax.experimental import pallas as pl
from jax.experimental.pallas import tpu as pltpu

LN_EPS = 1e-5          # nn.LayerNorm default eps
NCLASS = 10
CHANNELS = 3
IMG = 32
PROTO_NORM = True      # F.normalize(out) before the linear layer


# --------------------------------------------------------------------------
# pltpu.roll shift-convention probe (resolved before the fused kernel traces)
# --------------------------------------------------------------------------
def _probe_roll_convention():
    """True  -> pltpu.roll(x, s, 0)[i] == x[(i - s) % N]  (np.roll convention)
       False -> pltpu.roll(x, s, 0)[i] == x[(i + s) % N]"""
    def k(x_ref, o_ref):
        o_ref[...] = pltpu.roll(x_ref[...], shift=1, axis=0)

    x = jnp.arange(8, dtype=jnp.float32)[:, None] * jnp.ones((1, 128), jnp.float32)
    out = pl.pallas_call(
        k, out_shape=jax.ShapeDtypeStruct((8, 128), jnp.float32))(x)
    return bool(np.asarray(out)[0, 0] == 7.0)


# ----------------------------- in-kernel helpers ------------------------------

def _shift_rows(v, s, roll_numpy):
    """result[r] = v[(r + s) mod N] along axis 0 (callers mask wrapped rows)."""
    n = v.shape[0]
    k = (-s) % n if roll_numpy else s % n
    if k == 0:
        return v
    return pltpu.roll(v, shift=k, axis=0)


def _conv3x3(x2d, w_ref, H, W, roll_numpy):
    """3x3 / stride 1 / pad 1 conv on row-major (h, w)-flattened pixels.

    x2d:   (B*H*W, Cin) f32 activations, batch-major, pixels row-major.
    w_ref: (9, Cin, Cout) bf16 ref, tap index = ky*3 + kx (HWIO order).
    9 accumulated bf16 MXU matmuls on roll-shifted, border-masked copies
    (separable: 2 column shifts on the input, 2 row shifts on the outputs).
    Accumulation and masking stay f32.
    """
    N = x2d.shape[0]
    Cout = w_ref.shape[2]
    r = lax.broadcasted_iota(jnp.int32, (N, 1), 0)
    ww = r % W                      # w coordinate of every flat pixel row
    hh = (r % (H * W)) // W         # h coordinate (per sample)

    # Column(-w) pre-shifted copies, zeroed at the left/right image border.
    xs = []
    for kx in range(3):
        ox = kx - 1
        if ox == 0:
            xs.append(x2d)
        else:
            v = _shift_rows(x2d, ox, roll_numpy)
            ok = (ww + ox >= 0) & (ww + ox < W)
            xs.append(jnp.where(ok, v, 0.0))
    # bf16 operands for the MXU (cast once, reused by all 3 ky taps).
    xsb = [v.astype(jnp.bfloat16) for v in xs]

    acc = jnp.zeros((N, Cout), jnp.float32)
    for ky in range(3):
        oy = ky - 1
        z = jnp.dot(xsb[0], w_ref[3 * ky + 0], preferred_element_type=jnp.float32)
        z = z + jnp.dot(xsb[1], w_ref[3 * ky + 1], preferred_element_type=jnp.float32)
        z = z + jnp.dot(xsb[2], w_ref[3 * ky + 2], preferred_element_type=jnp.float32)
        if oy == 0:
            acc = acc + z
        else:
            zs = _shift_rows(z, oy * W, roll_numpy)
            ok = (hh + oy >= 0) & (hh + oy < H)
            acc = acc + jnp.where(ok, zs, 0.0)
    return acc


def _layernorm(y2d, npix, g=None, b=None):
    """Per-sample LayerNorm over (C,H,W), two-pass centered form.

    Reductions go sublane-first (npix axis, plain VALU adds over vregs); the
    cross-lane reduce only touches the tiny (B, 1, C) remainder.
    """
    n, c = y2d.shape
    bsz = n // npix
    y3 = y2d.reshape(bsz, npix, c)
    cnt = float(npix * c)
    mean = jnp.sum(jnp.sum(y3, axis=1, keepdims=True), axis=2, keepdims=True) / cnt
    yc = y3 - mean
    var = jnp.sum(jnp.sum(yc * yc, axis=1, keepdims=True), axis=2, keepdims=True) / cnt
    y3 = yc * lax.rsqrt(var + LN_EPS)
    if g is not None:
        y3 = y3 * g[None] + b[None]
    return y3.reshape(n, c)


def _avgpool2(y2d, npix, p_ref):
    """2x2 AvgPool(stride 2) as a per-sample bf16 selection matmul.

    y2d: (B*npix, C) f32; p_ref: (npix//4, npix) bf16 constant (0.25 entries).
    Returns (B, npix//4, C) f32.
    """
    n, c = y2d.shape
    bsz = n // npix
    yb = y2d.astype(jnp.bfloat16)
    pmat = p_ref[...]
    outs = [jnp.dot(pmat, yb[i * npix:(i + 1) * npix, :],
                    preferred_element_type=jnp.float32)[None]
            for i in range(bsz)]
    return jnp.concatenate(outs, axis=0)


# ------------------------------- fused kernel ---------------------------------

def _lognet_kernel(x_ref, w1_ref, w2_ref, w3_ref, w4_ref, w5_ref,
                   g3_ref, b3_ref, g4_ref, b4_ref, g5_ref, b5_ref,
                   p2_ref, p3_ref, p4_ref, p5_ref, wl_ref, bl_ref, o_ref,
                   *, roll_numpy):
    # block 1: conv -> LN (no affine) -> ReLU                (B,3,32,32) -> 32ch
    y = _conv3x3(x_ref[...], w1_ref, 32, 32, roll_numpy)
    y = jnp.maximum(_layernorm(y, 1024), 0.0)                   # (B*1024, 32)

    # block 2: conv -> LN (no affine) -> pool -> ReLU         -> (B,16,16,32)
    y = _conv3x3(y, w2_ref, 32, 32, roll_numpy)
    y = jnp.maximum(_avgpool2(_layernorm(y, 1024), 1024, p2_ref), 0.0)
    y = y.reshape(y.shape[0] * y.shape[1], y.shape[2])          # (B*256, 32)

    # block 3: conv -> LN(affine) -> pool -> ReLU              -> (B,8,8,64)
    y = _conv3x3(y, w3_ref, 16, 16, roll_numpy)
    y = _layernorm(y, 256, g3_ref[...], b3_ref[...])
    y = jnp.maximum(_avgpool2(y, 256, p3_ref), 0.0)
    y = y.reshape(y.shape[0] * y.shape[1], y.shape[2])          # (B*64, 64)

    # block 4                                                   -> (B,4,4,128)
    y = _conv3x3(y, w4_ref, 8, 8, roll_numpy)
    y = _layernorm(y, 64, g4_ref[...], b4_ref[...])
    y = jnp.maximum(_avgpool2(y, 64, p4_ref), 0.0)
    y = y.reshape(y.shape[0] * y.shape[1], y.shape[2])          # (B*16, 128)

    # block 5 (kept 3-D for the head)                           -> (B,2,2,256)
    y = _conv3x3(y, w5_ref, 4, 4, roll_numpy)
    y = _layernorm(y, 16, g5_ref[...], b5_ref[...])
    y = jnp.maximum(_avgpool2(y, 16, p5_ref), 0.0)              # (B, 4, 256)

    # head: proto 'ave' pool (mean over the 2x2 map), F.normalize, linear.
    # The head matmul is (B,256)x(256,10) -- negligible; kept f32 for accuracy.
    feat = jnp.mean(y, axis=1)                                  # (B, 256)
    if PROTO_NORM:
        nrm = jnp.sqrt(jnp.sum(feat * feat, axis=-1, keepdims=True))
        feat = feat / jnp.maximum(nrm, 1e-12)
    o_ref[...] = (jnp.dot(feat, wl_ref[...], preferred_element_type=jnp.float32)
                  + bl_ref[...])


# ------------------------------ JAX wrapper ------------------------------------

def _make_pool_matrix(H, W):
    """P so that P @ flat(x) is AvgPool2d(2) on row-major (h, w) flattening."""
    Ho, Wo = H // 2, W // 2
    P = np.zeros((Ho * Wo, H * W), np.float32)
    for i in range(Ho):
        for j in range(Wo):
            for di in range(2):
                for dj in range(2):
                    P[i * Wo + j, (2 * i + di) * W + (2 * j + dj)] = 0.25
    return P


_POOLS_NP = [_make_pool_matrix(s, s) for s in (32, 16, 8, 4)]


def _build_forward(roll_numpy):
    kernel_fn = functools.partial(_lognet_kernel, roll_numpy=roll_numpy)

    def kernel(*refs):
        kernel_fn(*refs)

    @jax.jit
    def fwd(x_nchw, p):
        B = x_nchw.shape[0]
        x2d = jnp.transpose(x_nchw, (0, 2, 3, 1)).reshape(B * IMG * IMG, CHANNELS)

        def wmat(w):     # HWIO (3,3,Cin,Cout) -> (9, Cin, Cout), bf16 for the MXU
            return w.reshape(9, w.shape[2], w.shape[3]).astype(jnp.bfloat16)

        def lnmat(a):    # torch-layout (C,H,W) -> (H*W, C), kept f32
            return jnp.transpose(a, (1, 2, 0)).reshape(-1, a.shape[0])

        pools = [jnp.asarray(pm).astype(jnp.bfloat16) for pm in _POOLS_NP]

        return pl.pallas_call(
            kernel,
            out_shape=jax.ShapeDtypeStruct((B, NCLASS), jnp.float32),
            compiler_params=pltpu.CompilerParams(
                vmem_limit_bytes=32 * 1024 * 1024),
        )(x2d,
          wmat(p['w1']), wmat(p['w2']), wmat(p['w3']), wmat(p['w4']), wmat(p['w5']),
          lnmat(p['g3']), lnmat(p['bb3']),
          lnmat(p['g4']), lnmat(p['bb4']),
          lnmat(p['g5']), lnmat(p['bb5']),
          pools[0], pools[1], pools[2], pools[3],
          p['w_lin'], p['b_lin'].reshape(1, NCLASS))

    return fwd


_STATE = {}


def lognet_forward(x_nchw, params):
    if 'fwd' not in _STATE:
        # Pin pltpu.roll semantics BEFORE the fused kernel can be traced; the
        # convention is bound statically into the jitted closure.
        _STATE['fwd'] = _build_forward(_probe_roll_convention())
    return _STATE['fwd'](x_nchw, params)


# --------------------------- parameters & reference ---------------------------

def init_params(key, scale=1):
    c1 = int(32 * scale); c2 = c1
    c3 = int(64 * scale); c4 = int(128 * scale); c5 = int(256 * scale)
    ks = jax.random.split(key, 7)

    def cw(k, cin, cout):
        return jax.random.normal(k, (3, 3, cin, cout), jnp.float32) / np.sqrt(9 * cin)

    return dict(
        w1=cw(ks[0], CHANNELS, c1), w2=cw(ks[1], c1, c2), w3=cw(ks[2], c2, c3),
        w4=cw(ks[3], c3, c4), w5=cw(ks[4], c4, c5),
        # bn1/bn2 have elementwise_affine=False (no params); bn3/4/5 init 1 / 0.
        g3=jnp.ones((c3, 16, 16), jnp.float32), bb3=jnp.zeros((c3, 16, 16), jnp.float32),
        g4=jnp.ones((c4, 8, 8), jnp.float32),  bb4=jnp.zeros((c4, 8, 8), jnp.float32),
        g5=jnp.ones((c5, 4, 4), jnp.float32),  bb5=jnp.zeros((c5, 4, 4), jnp.float32),
        w_lin=jax.random.normal(ks[5], (c5, NCLASS), jnp.float32) / np.sqrt(c5),
        b_lin=jax.random.normal(ks[6], (NCLASS,), jnp.float32) * 0.01,
    )


@jax.jit
def reference_forward(x_nchw, p):
    prec = lax.Precision.HIGHEST

    def conv(x, w):
        return lax.conv_general_dilated(
            x, w, (1, 1), ((1, 1), (1, 1)),
            dimension_numbers=('NCHW', 'HWIO', 'NCHW'), precision=prec)

    def ln(x, g=None, b=None):
        m = x.mean(axis=(1, 2, 3), keepdims=True)
        v = jnp.square(x - m).mean(axis=(1, 2, 3), keepdims=True)
        y = (x - m) / jnp.sqrt(v + LN_EPS)
        if g is not None:
            y = y * g[None] + b[None]
        return y

    def ap2(x):
        B, C, H, W = x.shape
        return x.reshape(B, C, H // 2, 2, W // 2, 2).mean(axis=(3, 5))

    relu = jax.nn.relu
    out = relu(ln(conv(x_nchw, p['w1'])))
    out = relu(ap2(ln(conv(out, p['w2']))))
    out = relu(ap2(ln(conv(out, p['w3']), p['g3'], p['bb3'])))
    out = relu(ap2(ln(conv(out, p['w4']), p['g4'], p['bb4'])))
    out = relu(ap2(ln(conv(out, p['w5']), p['g5'], p['bb5'])))
    out = ap2(out)                                       # proto_pool == 'ave'
    out = out.reshape(out.shape[0], -1)
    if PROTO_NORM:
        n = jnp.linalg.norm(out, axis=1, keepdims=True)
        out = out / jnp.maximum(n, 1e-12)
    return jnp.dot(out, p['w_lin'], precision=prec) + p['b_lin']


# ----------------------------------- main -------------------------------------

if __name__ == "__main__":
    key = jax.random.PRNGKey(0)
    pkey, xkey = jax.random.split(key)
    params = init_params(pkey)

    # Input spatial size / channels are fixed by the module's LayerNorm shapes.
    x = jax.random.normal(xkey, (2, CHANNELS, IMG, IMG), jnp.float32)

    out = jax.block_until_ready(lognet_forward(x, params))
    assert out.shape == (2, NCLASS)
    assert bool(jnp.all(jnp.isfinite(out)))

    ref = jax.block_until_ready(reference_forward(x, params))
    max_diff = float(np.max(np.abs(np.asarray(out) - np.asarray(ref))))
    assert np.allclose(np.asarray(out), np.asarray(ref), rtol=2e-2, atol=2e-2), \
        f"mismatch vs pure-JAX reference, max abs diff = {max_diff}"

    print("KERNEL_OK")
</pallas_src>

<mosaic_0001>
module attributes {stable_mosaic.version = 11 : i64} {
  func.func @k(%arg0: memref<8x128xf32, #tpu.memory_space<vmem>>, %arg1: memref<8x128xf32, #tpu.memory_space<vmem>>) attributes {dimension_semantics = [], scalar_prefetch = 0 : i64, scratch_operands = 0 : i64, tpu.core_type = #tpu.core_type<tc>} {
    %c0 = arith.constant 0 : index
    %c0_0 = arith.constant 0 : index
    %0 = vector.load %arg0[%c0, %c0_0] : memref<8x128xf32, #tpu.memory_space<vmem>>, vector<8x128xf32>
    %c1_i32 = arith.constant 1 : i32
    %1 = tpu.dynamic_rotate %0 by %c1_i32 dim 0 : vector<8x128xf32>, i32 -> vector<8x128xf32>
    %c0_1 = arith.constant 0 : index
    %c0_2 = arith.constant 0 : index
    %2 = vector.load %arg1[%c0_1, %c0_2] : memref<8x128xf32, #tpu.memory_space<vmem>>, vector<8x128xf32>
    tpu.vector_store %arg1[%c0_1, %c0_2], %1 {strides = array<i32>} : memref<8x128xf32, #tpu.memory_space<vmem>>, vector<8x128xf32>,
    return
  }
}

</mosaic_0001>

<bundles_post_ra>
// kernel: tpu_custom_call.1
= control target key start
LH: loop header
LB: loop body
LE: loop exit
PB: predicated region body
PF: predicated region fallthrough
CT: control target
= control target key end

     0   :  { %6 = vsyncpa [#allocation3], 0  ;;  %s103_s0 = inlined_call_operand.hbm [shape: f32[8,128], index: 0, kind: input, shape index: {}]   ;;  %s104_s1 = inlined_call_operand.hbm [shape: f32[8,128], index: 1, kind: output, shape index: {}]  }
   0x1   :  { %7 = vsyncpa [#allocation4], 0  ;;  %s85_s6 = smov [#allocation2]  }
   0x2   :  { %s14_s7 = sshll.u32 %s85_s6, 4  ;;  %s15_s7 = int_to_ptr.vmem [resolvable:$true] %s14_s7 }
   0x3   :  { %s49_s8 = scalar_lea.vmem %s15_s7, 128  ;;  %p54_p1 = scmp.lt.s32.totalorder %s15_s7, %s15_s7 }
   0x4   :  { %p50_p0 = scmp.ne.s32.totalorder %s15_s7, %s49_s8  ;;  %p55_p2 = scmp.lt.s32.totalorder %s49_s8, %s49_s8 }
   0x6   :  { %p56_p3 = por %p55_p2, %p54_p1 }
   0x8   :  { %p57_p4 = pnand %p56_p3, %p50_p0 }
   0xa   :  { %60 = shalt.err (!%p57_p4)
}
   0xb   :  { %17 = dma.hbm_to_vmem [thread:$0]  %s103_s0, 128, %s15_s7, [#allocation3]  }
   0xc   :  { %81 = dma.done.wait [#allocation3], 128  }
   0xd   :  { %82 = vsyncadd [#allocation3], 4294967168  ;;  %s86_s11 = smov [#allocation5]   ;;  %v21_v0 = vld [vmem:[#allocation2] sm:$0xff] }
   0xe   :  { %s30_s12 = sshll.u32 %s86_s11, 4  ;;  %v22_v1 = vrot.slane %v21_v0, 7  ;;  %s31_s12 = int_to_ptr.vmem [resolvable:$true] %s30_s12 }
   0xf   :  { %s61_s13 = scalar_lea.vmem %s31_s12, 128  ;;  %p66_p6 = scmp.lt.s32.totalorder %s31_s12, %s31_s12 }
  0x10   :  { %23 = vst [vmem:[#allocation5] sm:$0xff] %v22_v1  ;;  %p62_p5 = scmp.ne.s32.totalorder %s31_s12, %s61_s13  ;;  %p67_p7 = scmp.lt.s32.totalorder %s61_s13, %s61_s13 }
  0x12   :  { %p68_p8 = por %p67_p7, %p66_p6 }
  0x14   :  { %p69_p9 = pnand %p68_p8, %p62_p5 }
  0x16   :  { %72 = shalt.err (!%p69_p9)
}
  0x17   :  { %33 = dma.vmem_to_hbm [thread:$0]  %s31_s12, 128, %s104_s1, [#allocation4]  }
  0x18   :  { %83 = dma.done.wait [#allocation4], 128  }
  0x19   :  { %84 = vsyncadd [#allocation4], 4294967168 }
  0x1a   :  { %37 = vsyncpa [#allocation3], 1 }
  0x1b   :  { %38 = vsyncpa [#allocation4], 1 }

</bundles_post_ra>
